<compile_context>
chip_gen: v6e
topology: v6e:2x2x1
jax: 0.10.0
libtpu: 0.0.40
codegen_flags: <defaults>
</compile_context>

<pallas_src>
import functools

import jax
import jax.numpy as jnp
from jax.experimental import pallas as pl
from jax.experimental.pallas import tpu as pltpu

_EPS = 1e-5            # nn.BatchNorm1d default eps
_LANE = 128            # channel axes padded to multiples of the TPU lane width
_ROW_TILE_CAP = 512    # time rows per tile in passes 1/2 (multiple of 16 for bf16)
_POOL_TILE_CAP = 128   # pooled rows per tile in pass 3 (multiple of 8)
_VMEM_LIMIT = 32 * 1024 * 1024


def _round_up(n, m):
    return (n + m - 1) // m * m


def _pick_tile(total, cap):
    # Full extent if it fits in one tile (a full dim is always a legal block size),
    # otherwise a hardware-aligned cap.
    return total if total <= cap else cap


# ----------------------------------------------------------------------------
# Pass 1: conv1 on each row tile, accumulate per-channel sum / sum-of-squares.
# ----------------------------------------------------------------------------
def _stats1_kernel(x_ref, w1t_ref, sum_ref, sumsq_ref, *, T, tT, needs_mask):
    h = jnp.dot(x_ref[0], w1t_ref[...], preferred_element_type=jnp.float32)  # (tT, C_p)

    @pl.when((pl.program_id(0) == 0) & (pl.program_id(1) == 0))
    def _():
        sum_ref[...] = jnp.zeros_like(sum_ref)
        sumsq_ref[...] = jnp.zeros_like(sumsq_ref)

    if needs_mask:  # last time tile may read past T: drop those rows from the stats
        row = pl.program_id(1) * tT + jax.lax.broadcasted_iota(jnp.int32, (tT, 1), 0)
        h = jnp.where(row < T, h, 0.0)
    sum_ref[...] += jnp.sum(h, axis=0, keepdims=True)
    sumsq_ref[...] += jnp.sum(h * h, axis=0, keepdims=True)


# ----------------------------------------------------------------------------
# Pass 2: conv1 -> BN1 -> PReLU -> conv2 on each row tile; write h2; BN2 stats.
# ----------------------------------------------------------------------------
def _stage2_kernel(x_ref, w1t_ref, scale1_ref, shift1_ref, w2t_ref, a1_ref,
                   h2_ref, sum_ref, sumsq_ref, *, T, tT, needs_mask, matmul_dtype):
    h = jnp.dot(x_ref[0], w1t_ref[...], preferred_element_type=jnp.float32)  # (tT, C_p)
    u = h * scale1_ref[...] + shift1_ref[...]          # BN1 (precomputed scale/shift)
    a1 = a1_ref[0, 0]
    u = jnp.where(u >= 0.0, u, a1 * u)                 # PReLU #1
    h2 = jnp.dot(u.astype(matmul_dtype), w2t_ref[...],
                 preferred_element_type=jnp.float32)   # conv2
    h2_ref[0] = h2

    @pl.when((pl.program_id(0) == 0) & (pl.program_id(1) == 0))
    def _():
        sum_ref[...] = jnp.zeros_like(sum_ref)
        sumsq_ref[...] = jnp.zeros_like(sumsq_ref)

    if needs_mask:
        row = pl.program_id(1) * tT + jax.lax.broadcasted_iota(jnp.int32, (tT, 1), 0)
        h2 = jnp.where(row < T, h2, 0.0)
    sum_ref[...] += jnp.sum(h2, axis=0, keepdims=True)
    sumsq_ref[...] += jnp.sum(h2 * h2, axis=0, keepdims=True)


# ----------------------------------------------------------------------------
# Pass 3: BN2 -> + residual -> PReLU -> MaxPool1d(K, stride=K).
# The time axis arrives lane-folded: row t holds the K window elements as
# K consecutive 128-aligned channel groups, so each window element is a plain
# lane slice (no strided sublane access, no selection matmul).
# ----------------------------------------------------------------------------
def _stage3_kernel(*refs, K, C_p, Cin_p, has_ds_conv):
    if has_ds_conv:
        h2_ref, xr_ref, scale2_ref, shift2_ref, wds_ref, a2_ref, y_ref = refs
    else:
        h2_ref, xr_ref, scale2_ref, shift2_ref, a2_ref, y_ref = refs
        wds_ref = None
    s2 = scale2_ref[...]
    t2 = shift2_ref[...]
    a2 = a2_ref[0, 0]

    m = None
    for k in range(K):  # static small loop over window offsets
        v = h2_ref[0, :, pl.ds(k * C_p, C_p)] * s2 + t2          # BN2, (tTo, C_p)
        xk = xr_ref[0, :, pl.ds(k * Cin_p, Cin_p)]               # (tTo, Cin_p)
        if has_ds_conv:
            v = v + jnp.dot(xk, wds_ref[...], preferred_element_type=jnp.float32)
        else:
            v = v + xk.astype(jnp.float32)                       # Identity: no matmul
        v = jnp.where(v >= 0.0, v, a2 * v)                       # PReLU #2
        m = v if m is None else jnp.maximum(m, v)                # window max
    y_ref[0] = m


# ----------------------------------------------------------------------------
# Wrapper
# ----------------------------------------------------------------------------
def resnet_block_forward(x, params, *, pooling_kernel_size=3,
                         matmul_dtype=jnp.bfloat16):
    """x: (B, C_in, T) float32 (NCT, like PyTorch). Returns (B, C_out, T_out)."""
    B, Cin, T = x.shape
    Cout = params["w1"].shape[0]
    K = pooling_kernel_size
    T_out = T // K
    if T_out == 0:  # MaxPool1d(floor) would produce an empty time axis
        return jnp.zeros((B, Cout, 0), jnp.float32)

    has_ds_conv = params.get("wds", None) is not None
    if not has_ds_conv and Cin != Cout:
        raise ValueError("identity downsample requires in_channels == out_channels")

    Cin_p = _round_up(Cin, _LANE)
    C_p = _round_up(Cout, _LANE)

    # ---- layout / parameter prep (plain JAX glue) ----
    x_cl = jnp.transpose(x, (0, 2, 1)).astype(jnp.float32)       # (B, T, Cin)
    x_cl = jnp.pad(x_cl, ((0, 0), (0, 0), (0, Cin_p - Cin)))     # (B, T, Cin_p)
    x_md = x_cl.astype(matmul_dtype)

    def pad_w(w_t, rows, cols):
        return jnp.pad(w_t.astype(jnp.float32),
                       ((0, rows - w_t.shape[0]), (0, cols - w_t.shape[1]))
                       ).astype(matmul_dtype)

    w1t = pad_w(params["w1"].T, Cin_p, C_p)                      # (Cin_p, C_p)
    w2t = pad_w(params["w2"].T, C_p, C_p)                        # (C_p, C_p)
    wdst = pad_w(params["wds"].T, Cin_p, C_p) if has_ds_conv else None

    def pad_vec(v):
        return jnp.pad(v.astype(jnp.float32), (0, C_p - Cout)).reshape(1, C_p)

    g1, b1 = pad_vec(params["g1"]), pad_vec(params["b1"])
    g2, b2 = pad_vec(params["g2"]), pad_vec(params["b2"])
    a1 = jnp.asarray(params["a1"], jnp.float32).reshape(1, 1)
    a2 = jnp.asarray(params["a2"], jnp.float32).reshape(1, 1)

    tT = _pick_tile(T, _ROW_TILE_CAP)
    nT = pl.cdiv(T, tT)
    needs_mask = (T % tT) != 0
    count = float(B * T)
    itm = jnp.dtype(matmul_dtype).itemsize
    conv_flops = 2 * B * T * Cin_p * C_p

    chan_spec = pl.BlockSpec((1, C_p), lambda b, t: (0, 0))      # per-channel rows / accums
    smem_spec = pl.BlockSpec(memory_space=pltpu.MemorySpace.SMEM)
    cp_reduce = pltpu.CompilerParams(
        dimension_semantics=("arbitrary", "arbitrary"),          # stat accumulators revisited
        vmem_limit_bytes=_VMEM_LIMIT)

    # ---- pass 1: BN1 statistics of conv1(x) ----
    sum1, sumsq1 = pl.pallas_call(
        functools.partial(_stats1_kernel, T=T, tT=tT, needs_mask=needs_mask),
        out_shape=(jax.ShapeDtypeStruct((1, C_p), jnp.float32),
                   jax.ShapeDtypeStruct((1, C_p), jnp.float32)),
        grid=(B, nT),
        in_specs=[pl.BlockSpec((1, tT, Cin_p), lambda b, t: (b, t, 0)),
                  pl.BlockSpec((Cin_p, C_p), lambda b, t: (0, 0))],
        out_specs=(chan_spec, chan_spec),
        compiler_params=cp_reduce,
        cost_estimate=pl.CostEstimate(flops=conv_flops, transcendentals=0,
                                      bytes_accessed=B * T * Cin_p * itm),
    )(x_md, w1t)

    mu1 = sum1 / count
    var1 = sumsq1 / count - mu1 * mu1
    scale1 = g1 * jax.lax.rsqrt(var1 + _EPS)
    shift1 = b1 - mu1 * scale1

    # ---- pass 2: conv1 -> BN1 -> PReLU -> conv2 ; BN2 statistics ----
    h2, sum2, sumsq2 = pl.pallas_call(
        functools.partial(_stage2_kernel, T=T, tT=tT, needs_mask=needs_mask,
                          matmul_dtype=matmul_dtype),
        out_shape=(jax.ShapeDtypeStruct((B, T, C_p), jnp.float32),
                   jax.ShapeDtypeStruct((1, C_p), jnp.float32),
                   jax.ShapeDtypeStruct((1, C_p), jnp.float32)),
        grid=(B, nT),
        in_specs=[pl.BlockSpec((1, tT, Cin_p), lambda b, t: (b, t, 0)),
                  pl.BlockSpec((Cin_p, C_p), lambda b, t: (0, 0)),
                  chan_spec, chan_spec,
                  pl.BlockSpec((C_p, C_p), lambda b, t: (0, 0)),
                  smem_spec],
        out_specs=(pl.BlockSpec((1, tT, C_p), lambda b, t: (b, t, 0)),
                   chan_spec, chan_spec),
        compiler_params=cp_reduce,
        cost_estimate=pl.CostEstimate(
            flops=conv_flops + 2 * B * T * C_p * C_p, transcendentals=0,
            bytes_accessed=B * T * (Cin_p * itm + C_p * 4)),
    )(x_md, w1t, scale1, shift1, w2t, a1)

    mu2 = sum2 / count
    var2 = sumsq2 / count - mu2 * mu2
    scale2 = g2 * jax.lax.rsqrt(var2 + _EPS)
    shift2 = b2 - mu2 * scale2

    # ---- pass 3: BN2 -> + residual -> PReLU -> MaxPool1d(K, stride=K) ----
    Tp = T_out * K
    h2f = h2[:, :Tp, :].reshape(B, T_out, K * C_p)               # lane-folded windows
    x_res = x_md if has_ds_conv else x_cl                        # identity residual stays f32
    x4f = x_res[:, :Tp, :].reshape(B, T_out, K * Cin_p)

    tTo = _pick_tile(T_out, _POOL_TILE_CAP)
    nTo = pl.cdiv(T_out, tTo)

    in_specs3 = [pl.BlockSpec((1, tTo, K * C_p), lambda b, t: (b, t, 0)),
                 pl.BlockSpec((1, tTo, K * Cin_p), lambda b, t: (b, t, 0)),
                 chan_spec, chan_spec]
    operands3 = [h2f, x4f, scale2, shift2]
    if has_ds_conv:
        in_specs3.append(pl.BlockSpec((Cin_p, C_p), lambda b, t: (0, 0)))
        operands3.append(wdst)
    in_specs3.append(smem_spec)
    operands3.append(a2)

    y = pl.pallas_call(
        functools.partial(_stage3_kernel, K=K, C_p=C_p, Cin_p=Cin_p,
                          has_ds_conv=has_ds_conv),
        out_shape=jax.ShapeDtypeStruct((B, T_out, C_p), jnp.float32),
        grid=(B, nTo),
        in_specs=in_specs3,
        out_specs=pl.BlockSpec((1, tTo, C_p), lambda b, t: (b, t, 0)),
        compiler_params=pltpu.CompilerParams(
            dimension_semantics=("parallel", "parallel"),
            vmem_limit_bytes=_VMEM_LIMIT),
        cost_estimate=pl.CostEstimate(
            flops=(2 * B * Tp * Cin_p * C_p if has_ds_conv else 0) + 6 * B * Tp * C_p,
            transcendentals=0,
            bytes_accessed=B * Tp * (C_p * 4 + Cin_p * itm) + B * T_out * C_p * 4),
    )(*operands3)

    return jnp.transpose(y[:, :, :Cout], (0, 2, 1))              # back to NCT


# ----------------------------------------------------------------------------
# Pure-JAX reference mirroring the PyTorch module (NCT layout, training-mode BN)
# ----------------------------------------------------------------------------
def resnet_block_reference(x, params, pooling_kernel_size=3):
    B, Cin, T = x.shape
    Cout = params["w1"].shape[0]
    K = pooling_kernel_size
    hi = jax.lax.Precision.HIGHEST

    def bn(h, g, b):
        mu = jnp.mean(h, axis=(0, 2), keepdims=True)
        var = jnp.mean((h - mu) ** 2, axis=(0, 2), keepdims=True)
        return (h - mu) / jnp.sqrt(var + _EPS) * g[None, :, None] + b[None, :, None]

    h = jnp.einsum("oc,bct->bot", params["w1"], x, precision=hi)
    h = bn(h, params["g1"], params["b1"])
    h = jnp.where(h >= 0, h, params["a1"] * h)
    h = jnp.einsum("oc,bct->bot", params["w2"], h, precision=hi)
    h = bn(h, params["g2"], params["b2"])
    if params.get("wds", None) is not None:
        r = jnp.einsum("oc,bct->bot", params["wds"], x, precision=hi)
    else:
        r = x
    h = h + r
    h = jnp.where(h >= 0, h, params["a2"] * h)
    T_out = T // K
    h = h[:, :, : T_out * K].reshape(B, Cout, T_out, K)
    return jnp.max(h, axis=-1)


if __name__ == "__main__":
    root = jax.random.PRNGKey(0)
    K = 3

    def make_case(key, B, Cin, Cout, T):
        k1, k2, k3, kx = jax.random.split(key, 4)
        params = {
            "w1": 0.2 * jax.random.normal(k1, (Cout, Cin), jnp.float32),
            "w2": 0.2 * jax.random.normal(k2, (Cout, Cout), jnp.float32),
            # 1x1 conv downsample only when in_channels != out_channels (else Identity)
            "wds": (0.2 * jax.random.normal(k3, (Cout, Cin), jnp.float32)
                    if Cin != Cout else None),
            "g1": 1.1 * jnp.ones((Cout,), jnp.float32),
            "b1": jnp.full((Cout,), 0.05, jnp.float32),
            "g2": 0.9 * jnp.ones((Cout,), jnp.float32),
            "b2": jnp.full((Cout,), -0.05, jnp.float32),
            "a1": 0.25, "a2": 0.25,   # nn.PReLU default init
        }
        x = jax.random.normal(kx, (B, Cin, T), jnp.float32)
        return x, params

    # (name, B, Cin, Cout, T, matmul dtype, tolerance). bf16 MXU inputs (the perf
    # config for v6e/v7x) agree with the f32 reference to ~1e-2; f32 is checked tight.
    cases = [
        ("conv_downsample_f32", 2, 8, 16, 16, jnp.float32, 5e-3),
        ("conv_downsample_bf16", 2, 8, 16, 16, jnp.bfloat16, 3e-2),
        ("identity_downsample_bf16", 2, 16, 16, 17, jnp.bfloat16, 3e-2),
    ]
    for idx, (name, B, Cin, Cout, T, md, tol) in enumerate(cases):
        x, params = make_case(jax.random.fold_in(root, idx), B, Cin, Cout, T)
        y = resnet_block_forward(x, params, pooling_kernel_size=K, matmul_dtype=md)
        y = jax.block_until_ready(y)
        y_ref = resnet_block_reference(x, params, pooling_kernel_size=K)
        assert y.shape == (B, Cout, T // K), f"{name}: bad output shape {y.shape}"
        if not jnp.allclose(y, y_ref, atol=tol, rtol=tol):
            err = float(jnp.max(jnp.abs(y - y_ref)))
            raise AssertionError(f"{name}: max abs err {err:.4e} exceeds tol {tol}")
    print("KERNEL_OK")
</pallas_src>

<mosaic_0001>
module attributes {stable_mosaic.version = 11 : i64} {
  func.func @_stats1_kernel(%arg0: i32, %arg1: i32, %arg2: memref<1x16x128xf32, #tpu.memory_space<vmem>>, %arg3: memref<128x128xf32, #tpu.memory_space<vmem>>, %arg4: memref<1x128xf32, #tpu.memory_space<vmem>>, %arg5: memref<1x128xf32, #tpu.memory_space<vmem>>) attributes {dimension_semantics = [#tpu.dimension_semantics<arbitrary>, #tpu.dimension_semantics<arbitrary>], iteration_bounds = array<i64: 2, 1>, scalar_prefetch = 0 : i64, scratch_operands = 0 : i64, tpu.core_type = #tpu.core_type<tc>, window_params = [{transform_indices = @transform_0, window_bounds = array<i64: 1, 16, 128>}, {pipeline_mode = #tpu.pipeline_mode<synchronous>, transform_indices = @transform_1, window_bounds = array<i64: 128, 128>}, {pipeline_mode = #tpu.pipeline_mode<synchronous>, transform_indices = @transform_2, window_bounds = array<i64: 1, 128>}, {pipeline_mode = #tpu.pipeline_mode<synchronous>, transform_indices = @transform_3, window_bounds = array<i64: 1, 128>}]} {
    %c0 = arith.constant 0 : index
    %c0_0 = arith.constant 0 : index
    %c0_1 = arith.constant 0 : index
    %0 = vector.load %arg2[%c0, %c0_0, %c0_1] : memref<1x16x128xf32, #tpu.memory_space<vmem>>, vector<1x16x128xf32>
    %1 = vector.shape_cast %0 : vector<1x16x128xf32> to vector<16x128xf32>
    %c0_2 = arith.constant 0 : index
    %c0_3 = arith.constant 0 : index
    %2 = vector.load %arg3[%c0_2, %c0_3] : memref<128x128xf32, #tpu.memory_space<vmem>>, vector<128x128xf32>
    %cst = arith.constant dense<0.000000e+00> : vector<16x128xf32>
    %3 = tpu.matmul %1, %2, %cst {dimension_numbers = #tpu.dot_dimension_numbers<[1], [0], [0], [1], [0, 0, 1, 1], [], []>} : vector<16x128xf32>, vector<128x128xf32>, vector<16x128xf32> -> vector<16x128xf32>
    %c0_i32 = arith.constant 0 : i32
    %4 = arith.cmpi eq, %arg0, %c0_i32 : i32
    %c0_i32_4 = arith.constant 0 : i32
    %5 = arith.cmpi eq, %arg1, %c0_i32_4 : i32
    %6 = arith.andi %4, %5 : i1
    %7 = arith.extui %6 : i1 to i32
    %c0_i32_5 = arith.constant 0 : i32
    %8 = arith.cmpi ne, %7, %c0_i32_5 : i32
    scf.if %8 {
      %cst_16 = arith.constant 0.000000e+00 : f32
      %20 = vector.broadcast %cst_16 : f32 to vector<1x128xf32>
      %c0_17 = arith.constant 0 : index
      %c0_18 = arith.constant 0 : index
      %21 = vector.load %arg4[%c0_17, %c0_18] : memref<1x128xf32, #tpu.memory_space<vmem>>, vector<1x128xf32>
      tpu.vector_store %arg4[%c0_17, %c0_18], %20 {strides = array<i32>} : memref<1x128xf32, #tpu.memory_space<vmem>>, vector<1x128xf32>,
      %cst_19 = arith.constant 0.000000e+00 : f32
      %22 = vector.broadcast %cst_19 : f32 to vector<1x128xf32>
      %c0_20 = arith.constant 0 : index
      %c0_21 = arith.constant 0 : index
      %23 = vector.load %arg5[%c0_20, %c0_21] : memref<1x128xf32, #tpu.memory_space<vmem>>, vector<1x128xf32>
      tpu.vector_store %arg5[%c0_20, %c0_21], %22 {strides = array<i32>} : memref<1x128xf32, #tpu.memory_space<vmem>>, vector<1x128xf32>,
    } else {
    }
    %c0_6 = arith.constant 0 : index
    %c0_7 = arith.constant 0 : index
    %9 = vector.load %arg4[%c0_6, %c0_7] : memref<1x128xf32, #tpu.memory_space<vmem>>, vector<1x128xf32>
    %cst_8 = arith.constant dense<0.000000e+00> : vector<128xf32>
    %10 = vector.multi_reduction <add>, %3, %cst_8 [0] : vector<16x128xf32> to vector<128xf32>
    %11 = vector.shape_cast %10 : vector<128xf32> to vector<1x128xf32>
    %12 = arith.addf %9, %11 : vector<1x128xf32>
    %c0_9 = arith.constant 0 : index
    %c0_10 = arith.constant 0 : index
    %13 = vector.load %arg4[%c0_9, %c0_10] : memref<1x128xf32, #tpu.memory_space<vmem>>, vector<1x128xf32>
    tpu.vector_store %arg4[%c0_9, %c0_10], %12 {strides = array<i32>} : memref<1x128xf32, #tpu.memory_space<vmem>>, vector<1x128xf32>,
    %c0_11 = arith.constant 0 : index
    %c0_12 = arith.constant 0 : index
    %14 = vector.load %arg5[%c0_11, %c0_12] : memref<1x128xf32, #tpu.memory_space<vmem>>, vector<1x128xf32>
    %15 = arith.mulf %3, %3 : vector<16x128xf32>
    %cst_13 = arith.constant dense<0.000000e+00> : vector<128xf32>
    %16 = vector.multi_reduction <add>, %15, %cst_13 [0] : vector<16x128xf32> to vector<128xf32>
    %17 = vector.shape_cast %16 : vector<128xf32> to vector<1x128xf32>
    %18 = arith.addf %14, %17 : vector<1x128xf32>
    %c0_14 = arith.constant 0 : index
    %c0_15 = arith.constant 0 : index
    %19 = vector.load %arg5[%c0_14, %c0_15] : memref<1x128xf32, #tpu.memory_space<vmem>>, vector<1x128xf32>
    tpu.vector_store %arg5[%c0_14, %c0_15], %18 {strides = array<i32>} : memref<1x128xf32, #tpu.memory_space<vmem>>, vector<1x128xf32>,
    return
  }
  func.func @transform_0(%arg0: i32, %arg1: i32) -> (i32, i32, i32) {
    %c0_i32 = arith.constant 0 : i32
    %c0_i32_0 = arith.constant 0 : i32
    return %arg0, %arg1, %c0_i32 : i32, i32, i32
  }
  func.func @transform_1(%arg0: i32, %arg1: i32) -> (i32, i32) {
    %c0_i32 = arith.constant 0 : i32
    %c0_i32_0 = arith.constant 0 : i32
    %c0_i32_1 = arith.constant 0 : i32
    return %c0_i32, %c0_i32_0 : i32, i32
  }
  func.func @transform_2(%arg0: i32, %arg1: i32) -> (i32, i32) {
    %c0_i32 = arith.constant 0 : i32
    %c0_i32_0 = arith.constant 0 : i32
    %c0_i32_1 = arith.constant 0 : i32
    return %c0_i32, %c0_i32_0 : i32, i32
  }
  func.func @transform_3(%arg0: i32, %arg1: i32) -> (i32, i32) {
    %c0_i32 = arith.constant 0 : i32
    %c0_i32_0 = arith.constant 0 : i32
    %c0_i32_1 = arith.constant 0 : i32
    return %c0_i32, %c0_i32_0 : i32, i32
  }
}

</mosaic_0001>

<bundles_post_ra>
// kernel: tpu_custom_call.1
= control target key start
LH: loop header
LB: loop body
LE: loop exit
PB: predicated region body
PF: predicated region fallthrough
CT: control target
= control target key end

     0   :  { %9 = vsyncpa [#allocation3], 0  ;;  %s940_s0 = inlined_call_operand.hbm [shape: f32[2,16,128], index: 0, kind: input, shape index: {}]   ;;  %s941_s1 = inlined_call_operand.hbm [shape: f32[128,128], index: 1, kind: input, shape index: {}]   ;;  %s942_s2 = inlined_call_operand.hbm [shape: f32[1,128], index: 2, kind: output, shape index: {0}]   ;;  %s943_s3 = inlined_call_operand.hbm [shape: f32[1,128], index: 3, kind: output, shape index: {1}]  }
   0x1   :  { %11 = vsyncpa [#allocation3 + $0x1], 0 }
   0x2   :  { %12 = vsyncpa [#allocation6], 0 }
   0x3   :  { %13 = vsyncpa [#allocation4], 0 }
   0x4   :  { %14 = vsyncpa [#allocation9], 0  ;;  %s780_s12 = smov 0   ;;  %s782_s13 = smov 0  }
   0x5   :  { %s784_s14 = smov 0   ;;  %s786_s15 = smov 0  }
   0x6   :  { %s788_s16 = smov 0   ;;  %s790_s17 = smov 0  }
   0x7 LB: > { %s432_s18 = sadd.s32 4294967295, %s751_s17   ;;  %p54_p0 = scmp.ne.s32.totalorder %s735_s13, %s731_s12  ;;  %s751_s17 = sphi %s790_s17, %s20_s17   ;;  %s747_s16 = sphi %s788_s16, %s954_s16   ;;  %s743_s15 = sphi %s786_s15, %s953_s15   ;;  %s739_s14 = sphi %s784_s14, %s952_s14   ;;  %s735_s13 = sphi %s782_s13, %s951_s13   ;;  %s731_s12 = sphi %s780_s12, %s950_s12  }
   0x8   : > { %p812_p1 = scmp.eq.s32.totalorder %s432_s18, 0  ;;  %p433_p2 = scmp.ge.s32.totalorder %s751_s17, 1 }
   0x9   : > { %p128_p3 = scmp.lt.s32.totalorder %s751_s17, 3  ;;  %s753_s22 = smov [#allocation5]  }
   0xa   : > { %p820_p4 = por %p812_p1, %p54_p0  ;;  %s140_s23 = sshll.u32 %s753_s22, 4  ;;  %s141_s23 = int_to_ptr.vmem [resolvable:$true] %s140_s23 }
   0xb   : > { %p824_p5 = pnand %p433_p2, %p128_p3  ;;  %s32_s25 = sadd.s32 1, %s747_s16 }
   0xc   : > { %s598_s26 = scalar_lea.vmem %s141_s23, 2048  ;;  %p606_p12 = scmp.lt.s32.totalorder %s141_s23, %s141_s23 }
   0xd   : > { %p518_p6 = pneg %p824_p5  ;;  %p599_p9 = scmp.ne.s32.totalorder %s141_s23, %s598_s26 }
   0xe   : > { %p607_p13 = scmp.lt.s32.totalorder %s598_s26, %s598_s26 }
   0xf   : > { %p832_p7 = pnand %p518_p6, %p812_p1 }
  0x10   : > { %p608_p0 = por %p607_p13, %p606_p12 }
  0x11   : > { %p589_p8 = pneg %p832_p7 }
  0x13   : > { %p601_p10 = pnand %p599_p9, %p589_p8 }
  0x15   : > { %p602_p11 = pneg %p601_p10 }
  0x17   : > { %p609_p2 = pnand %p608_p0, %p602_p11 }
  0x19   : > { %612 = shalt.err (!%p609_p2)
}
  0x1a   : > { %s754_s27 = smov 128   ;;  %s755_s28 = smov 8  }
  0x1b   : > { %521 = dma.hbm_to_vmem [thread:$0]  (!%p832_p7), %s941_s1, 2048, %s141_s23, [#allocation6], %s754_s27, %s754_s27, %s755_s28  }
  0x1c   : > { %p34_p3 = scmp.ge.s32.totalorder %s32_s25, 2  ;;  %s41_s4 = sadd.s32 1, %s739_s14 }
  0x1d   : > { %p48_p6 = scmp.ne.s32.totalorder %s739_s14, %s735_s13  ;;  %p49_p8 = scmp.eq.s32.totalorder %s751_s17, 0 }
  0x1e   : > { %s956_s25 = smov (%p34_p3, %s32_s25), 0  ;;  %p527_p10 = scmp.lt.s32.totalorder %s751_s17, 2 }
  0x1f   : > { %p50_p9 = por %p49_p8, %p48_p6  ;;  %s36_s5 = ssub.s32 %s747_s16, %s956_s25 }
  0x20   : > { %s154_s6 = sand.u32 1, %s739_s14   ;;  %p39_p11 = scmp.eq.s32.totalorder %s36_s5, 0 }
  0x21   : > { %s436_s7 = sshll.u32 %s154_s6, 4  ;;  %s449_s8 = sshll.u32 %s747_s16, 8 }
  0x22   : > { %s859_s9 = scalar_select %p39_p11, %s739_s14, %s41_s4  }
  0x23   : > { %s166_s12 = scalar_lea.hbm %s940_s0, %s449_s8  ;;  %s158_s22 = scalar_lea.vmem [#allocation2], %s436_s7 }
  0x24   : > { %s167_s23 = sshll.u32 %s158_s22, 4  ;;  %p864_p7 = pnand %p527_p10, %p50_p9  ;;  %s168_s23 = int_to_ptr.vmem [resolvable:$true] %s167_s23 }
  0x25   : > { %s155_s26 = scalar_lea.sflag [#allocation3], %s154_s6  ;;  %s626_s29 = scalar_lea.vmem %s168_s23, 256 }
  0x26   : > { %p615_p12 = pneg %p864_p7  ;;  %p627_p13 = scmp.ne.s32.totalorder %s168_s23, %s626_s29 }
  0x27   : > { %s756_s30 = smov [#allocation2]  }
  0x28   : > { %p629_p0 = pnand %p627_p13, %p615_p12  ;;  %s631_s4 = sshll.u32 %s756_s30, 4  ;;  %s632_s4 = int_to_ptr.vmem [resolvable:$false] %s631_s4 }
  0x29   : > { %s633_s5 = scalar_lea.vmem %s632_s4, 512  ;;  %p634_p3 = scmp.lt.s32.totalorder %s168_s23, %s632_s4 }
  0x2a   : > { %p630_p2 = pneg %p629_p0  ;;  %p635_p6 = scmp.lt.s32.totalorder %s633_s5, %s626_s29 }
  0x2c   : > { %p636_p8 = por %p635_p6, %p634_p3 }
  0x2e   : > { %p637_p9 = pnand %p636_p8, %p630_p2 }
  0x30   : > { %640 = shalt.err (!%p637_p9)
}
  0x31   : > { %525 = dma.hbm_to_vmem [thread:$0]  (!%p864_p7), %s166_s12, 256, %s168_s23, %s155_s26, %s754_s27, %s754_s27, %s755_s28  }
  0x32   : > { %179 = sbr.rel (%p824_p5) target bundleno = 320 (0x140), region = 28  ;;  %s181_s6 = sand.u32 (!%p824_p5), 1, %s735_s13  }
  0x33   : > { %s878_s7 = sshll.u32 (!%p824_p5), %s181_s6, 4  ;;  %s182_s8 = scalar_lea.sflag (!%p824_p5), [#allocation3], %s181_s6 }
  0x34   : > { %s185_s10 = scalar_lea.vmem (!%p824_p5), [#allocation2], %s878_s7 }
  0x37   : > { %714 = dma.done.wait (%p820_p4), %s182_s8, 256  }
  0x38   : > { %716 = vsyncadd (%p820_p4), %s182_s8, 4294967040 }
  0x39   : > { %718 = dma.done.wait (%p812_p1), [#allocation6], 2048  }
  0x3a   : > { %720 = vsyncadd (%p812_p1), [#allocation6], 4294965248  ;;  %v225_v0 = vld [vmem:[#allocation5 + $0x78] sm:$0xff]  ;;  %v224_v1 = vld [vmem:[#allocation5 + $0x70] sm:$0xff]  ;;  %p301_p1 = scmp.eq.s32.totalorder %s743_s15, 0 }
  0x3b   : > { %469 = vmatprep.subr.mxu0 %v225_v0  ;;  %v223_v2 = vld [vmem:[#allocation5 + $0x68] sm:$0xff]  ;;  %v222_v3 = vld [vmem:[#allocation5 + $0x60] sm:$0xff]  ;;  %v221_v5 = vld [vmem:[#allocation5 + $0x58] sm:$0xff]  ;;  %v757_v20 = vmov (%p301_p1), 0.0  }
  0x3c   : > { %470 = vmatpush3.msra.mxu0 %v225_v0  ;;  %v208_v4 = vld [vmem:[%s185_s10] sm:$0xff]  ;;  %v219_v7 = vld [vmem:[#allocation5 + $0x48] sm:$0xff]  ;;  %v217_v9 = vld [vmem:[#allocation5 + $0x38] sm:$0xff]  ;;  %307 = vst [vmem:[#allocation7] sm:$0x1] (%p301_p1), %v757_v20 }
  0x3d   : > { %471 = vmatprep.subr.mxu0 %v224_v1  ;;  %501 = vmatprep.mubr.f32.mxu0 %v208_v4  ;;  %v220_v6 = vld [vmem:[#allocation5 + $0x50] sm:$0xff]  ;;  %v218_v8 = vld [vmem:[#allocation5 + $0x40] sm:$0xff]  ;;  %v215_v11 = vld [vmem:[#allocation5 + $0x28] sm:$0xff]  ;;  %308 = vst [vmem:[#allocation8] sm:$0x1] (%p301_p1), %v757_v20 }
  0x3e   : > { %472 = vmatpush3.msra.mxu0 %v224_v1  ;;  %v216_v10 = vld [vmem:[#allocation5 + $0x30] sm:$0xff]  ;;  %v214_v12 = vld [vmem:[#allocation5 + $0x20] sm:$0xff]  ;;  %v213_v13 = vld [vmem:[#allocation5 + $0x18] sm:$0xff] }
  0x3f   : > { %473 = vmatprep.subr.mxu0 %v223_v2  ;;  %v212_v14 = vld [vmem:[#allocation5 + $0x10] sm:$0xff]  ;;  %v211_v15 = vld [vmem:[#allocation5 + $0x8] sm:$0xff]  ;;  %v210_v16 = vld [vmem:[#allocation5] sm:$0xff] }
  0x40   : > { %474 = vmatpush3.msra.mxu0 %v223_v2  ;;  %v209_v17 = vld [vmem:[%s185_s10 + $0x8] sm:$0xff] }
  0x41   : > { %475 = vmatprep.subr.mxu0 %v222_v3 }
  0x42   : > { %476 = vmatpush3.msra.mxu0 %v222_v3 }
  0x43   : > { %477 = vmatprep.subr.mxu0 %v221_v5 }
  0x44   : > { %478 = vmatpush3.msra.mxu0 %v221_v5 }
  0x45   : > { %479 = vmatprep.subr.mxu0 %v220_v6 }
  0x46   : > { %480 = vmatpush3.msra.mxu0 %v220_v6 }
  0x47   : > { %481 = vmatprep.subr.mxu0 %v219_v7 }
  0x48   : > { %482 = vmatpush3.msra.mxu0 %v219_v7 }
  0x49   : > { %483 = vmatprep.subr.mxu0 %v218_v8 }
  0x4a   : > { %484 = vmatpush3.msra.mxu0 %v218_v8 }
  0x4b   : > { %485 = vmatprep.subr.mxu0 %v217_v9 }
  0x4c   : > { %486 = vmatpush3.msra.mxu0 %v217_v9 }
  0x4d   : > { %487 = vmatprep.subr.mxu0 %v216_v10 }
  0x4e   : > { %488 = vmatpush3.msra.mxu0 %v216_v10 }
  0x4f   : > { %489 = vmatprep.subr.mxu0 %v215_v11 }
  0x50   : > { %490 = vmatpush3.msra.mxu0 %v215_v11 }
  0x51   : > { %491 = vmatprep.subr.mxu0 %v214_v12 }
  0x52   : > { %492 = vmatpush3.msra.mxu0 %v214_v12 }
  0x53   : > { %493 = vmatprep.subr.mxu0 %v213_v13 }
  0x54   : > { %494 = vmatpush3.msra.mxu0 %v213_v13 }
  0x55   : > { %495 = vmatprep.subr.mxu0 %v212_v14 }
  0x56   : > { %496 = vmatpush3.msra.mxu0 %v212_v14 }
  0x57   : > { %497 = vmatprep.subr.mxu0 %v211_v15 }
  0x58   : > { %498 = vmatpush3.msra.mxu0 %v211_v15 }
  0x59   : > { %499 = vmatprep.subr.mxu0 %v210_v16 }
  0x5a   : > { %500 = vmatpush3.msra.mxu0 %v210_v16 }
  0x5b   : > { %502 = vmatmul.mubr.f32.vlgmr.msra.gmra.mxu0 %v209_v17 }
 0x119   : > { %306 = sbr.rel (!%p301_p1) target bundleno = 286 (0x11e), region = 40 }
 0x11b   : > { %v503_v18 = vpop.f32.mrf.mxu0 }
 0x11d   : > { %v292_v19 = vpop.f32.mrf.mxu0 }
 0x11e PF: > { %v310_v21 = vadd.f32 %v503_v18, %v292_v19  ;;  %v320_v22 = vmul.f32 %v292_v19, %v292_v19  ;;  %v321_v23 = vmul.f32 %v503_v18, %v503_v18  ;;  %v309_v34 = vld [vmem:[#allocation7] sm:$0x1]  ;;  %s758_s15 = smov [#allocation7]   ;;  %v319_v37 = vld [vmem:[#allocation8] sm:$0x1]  ;;  %p896_p4 = scmp.eq.s32.totalorder %s432_s18, 1 }
 0x11f   : > { %s338_s19 = sshll.u32 %s758_s15, 4  ;;  %s759_s21 = smov [#allocation8]   ;;  %s339_s19 = int_to_ptr.vmem [resolvable:$true] %s338_s19 }
 0x120   : > { %v311_v24 = vrot.slane %v310_v21, 4  ;;  %v322_v25 = vadd.f32 %v321_v23, %v320_v22  ;;  %s349_s27 = sshll.u32 %s759_s21, 4  ;;  %s641_s28 = scalar_lea.vmem %s339_s19, 16  ;;  %s350_s27 = int_to_ptr.vmem [resolvable:$true] %s349_s27 }
 0x121   : > { %p642_p5 = scmp.ne.s32.totalorder %s339_s19, %s641_s28  ;;  %s647_s11 = scalar_lea.vmem %s339_s19, 32 }
 0x122   : > { %v312_v26 = vadd.f32 %v311_v24, %v310_v21  ;;  %v323_v27 = vrot.slane %v322_v25, 4  ;;  %p648_p7 = scmp.lt.s32.totalorder %s339_s19, %s339_s19  ;;  %p649_p12 = scmp.lt.s32.totalorder %s647_s11, %s641_s28 }
 0x123   : > { %p643_p10 = pnand %p642_p5, %p896_p4 }
 0x124   : > { %v313_v28 = vrot.slane %v312_v26, 2  ;;  %v324_v29 = vadd.f32 %v323_v27, %v322_v25  ;;  %p650_p13 = por %p649_p12, %p648_p7 }
 0x125   : > { %p644_p11 = pneg %p643_p10 }
 0x126   : > { %v314_v30 = vadd.f32 %v313_v28, %v312_v26  ;;  %v325_v31 = vrot.slane %v324_v29, 2 }
 0x127   : > { %p651_p0 = pnand %p650_p13, %p644_p11 }
 0x128   : > { %v315_v32 = vrot.slane %v314_v30, 1  ;;  %v326_v33 = vadd.f32 %v325_v31, %v324_v29 }
 0x12a   : > { %v316_v35 = vadd.f32 %v315_v32, %v314_v30  ;;  %v327_v36 = vrot.slane %v326_v33, 1 }
 0x12c   : > { %v317_v38 = vadd.f32 %v316_v35, %v309_v34  ;;  %v328_v39 = vadd.f32 %v327_v36, %v326_v33 }
 0x12e   : > { %318 = vst [vmem:[#allocation7] sm:$0x1] %v317_v38  ;;  %v329_v40 = vadd.f32 %v328_v39, %v319_v37 }
 0x12f   : > { %654 = shalt.err (!%p651_p0)
}
 0x130   : > { %511 = dma.vmem_to_hbm [thread:$0]  (%p896_p4), %s339_s19, 16, %s942_s2, [#allocation4]   ;;  %330 = vst [vmem:[#allocation8] sm:$0x1] %v329_v40 }
 0x131   : > { %s665_s22 = scalar_lea.vmem %s350_s27, 16  ;;  %s671_s23 = scalar_lea.vmem %s350_s27, 32 }
 0x132   : > { %p666_p2 = scmp.ne.s32.totalorder %s350_s27, %s665_s22  ;;  %p672_p8 = scmp.lt.s32.totalorder %s350_s27, %s350_s27 }
 0x133   : > { %p673_p9 = scmp.lt.s32.totalorder %s671_s23, %s665_s22 }
 0x134   : > { %p667_p3 = pnand %p666_p2, %p896_p4 }
 0x135   : > { %p674_p1 = por %p673_p9, %p672_p8 }
 0x136   : > { %p668_p6 = pneg %p667_p3 }
 0x138   : > { %p675_p5 = pnand %p674_p1, %p668_p6 }
 0x13a   : > { %678 = shalt.err (!%p675_p5)
}
 0x13b   : > { %513 = dma.vmem_to_hbm [thread:$0]  (%p896_p4), %s350_s27, 16, %s943_s3, [#allocation9]  }
 0x13c   : > { %722 = dma.done.wait (%p896_p4), [#allocation4], 16  }
 0x13d   : > { %724 = vsyncadd (%p896_p4), [#allocation4], 4294967280 }
 0x13e   : > { %726 = dma.done.wait (%p896_p4), [#allocation9], 16  }
 0x13f   : > { %728 = vsyncadd (%p896_p4), [#allocation9], 4294967280 }
 0x140 PF: > { %s20_s17 = sadd.s32 1, %s751_s17   ;;  %s950_s12 = smov %s735_s13 }
 0x141   : > { %p17_p10 = scmp.ge.s32.totalorder %s20_s17, 4   ;;  %s951_s13 = smov %s739_s14 }
 0x142   : > { %s952_s14 = smov %s859_s9  ;;  %s953_s15 = smov %s747_s16 }
 0x143   : > { %s954_s16 = smov %s956_s25  ;;  %19 = sbr.rel (!%p17_p10) target bundleno = 7 (0x7), region = 81 }
 0x148   :  { %366 = vsyncpa [#allocation3], 1 }
 0x149   :  { %368 = vsyncpa [#allocation3 + $0x1], 1 }
 0x14a   :  { %369 = vsyncpa [#allocation6], 1 }
 0x14b   :  { %370 = vsyncpa [#allocation4], 1 }
 0x14c   :  { %372 = vsyncpa [#allocation4 + $0x1], 1 }
 0x14d   :  { %373 = vsyncpa [#allocation9], 1 }

</bundles_post_ra>
